<compile_context>
chip_gen: v7x
topology: tpu7x:2x2x1
jax: 0.10.0
libtpu: 0.0.40
codegen_flags: <defaults>
</compile_context>

<pallas_src>
import functools

import jax
import jax.numpy as jnp
from jax.experimental import pallas as pl
from jax.experimental.pallas import tpu as pltpu

EPS = 1e-5  # RMSNorm epsilon


def _rmsnorm_f32(x, gain):
    # x: (T, D) f32, gain: (1, D) f32
    ms = jnp.mean(x * x, axis=-1, keepdims=True)
    return x * jax.lax.rsqrt(ms + EPS) * gain


# --------------------- kernel 1: RMSNorm1 + QKV + RoPE ----------------------
def _qkv_rope_kernel(x_ref, g1_ref, wq_ref, wk_ref, wv_ref, cos_ref, sin_ref,
                     q_ref, k_ref, v_ref, *, num_heads):
    x = x_ref[0].astype(jnp.float32)                        # (TS, D)
    D = x.shape[-1]
    dh = D // num_heads
    half = dh // 2

    xn = _rmsnorm_f32(x, g1_ref[...]).astype(wq_ref.dtype)

    scale = 1.0 / jnp.sqrt(jnp.float32(dh))
    # Weights are pre-transposed to (in, out): no .T / relayout on-chip.
    q = jnp.dot(xn, wq_ref[...], preferred_element_type=jnp.float32) * scale
    k = jnp.dot(xn, wk_ref[...], preferred_element_type=jnp.float32)
    v = jnp.dot(xn, wv_ref[...], preferred_element_type=jnp.float32)

    cos = cos_ref[...]                                      # (TS, dh//2)
    sin = sin_ref[...]
    for h in range(num_heads):                              # static, small
        b0 = h * dh
        q1, q2 = q[:, b0:b0 + half], q[:, b0 + half:b0 + dh]
        k1, k2 = k[:, b0:b0 + half], k[:, b0 + half:b0 + dh]
        q_ref[0, h, :, :] = jnp.concatenate(
            [q1 * cos - q2 * sin, q2 * cos + q1 * sin], axis=-1).astype(q_ref.dtype)
        k_ref[0, h, :, :] = jnp.concatenate(
            [k1 * cos - k2 * sin, k2 * cos + k1 * sin], axis=-1).astype(k_ref.dtype)
        v_ref[0, h, :, :] = v[:, b0:b0 + dh].astype(v_ref.dtype)


# --------------------- kernel 2: flash attention (causal) -------------------
def _flash_attn_kernel(q_ref, k_ref, v_ref, o_ref, m_ref, l_ref, acc_ref,
                       *, tq, tk):
    qi = pl.program_id(1)
    ki = pl.program_id(2)

    @pl.when(ki == 0)
    def _init():
        m_ref[...] = jnp.full(m_ref.shape, -1e30, jnp.float32)
        l_ref[...] = jnp.zeros(l_ref.shape, jnp.float32)
        acc_ref[...] = jnp.zeros(acc_ref.shape, jnp.float32)

    # Skip KV tiles that lie entirely in the causal future of this Q tile.
    @pl.when(ki * tk <= qi * tq + (tq - 1))
    def _update():
        q = q_ref[0]                                        # (H, TQ, dh), scaled
        k = k_ref[0]                                        # (H, TK, dh)
        v = v_ref[0]                                        # (H, TK, dh)
        s = jnp.einsum('hqd,hkd->hqk', q, k,
                       preferred_element_type=jnp.float32)  # (H, TQ, TK)
        row = jax.lax.broadcasted_iota(jnp.int32, (tq, tk), 0) + qi * tq
        col = jax.lax.broadcasted_iota(jnp.int32, (tq, tk), 1) + ki * tk
        s = jnp.where((col <= row)[None, :, :], s, -1e30)

        m_prev = m_ref[...]
        m_new = jnp.maximum(m_prev, jnp.max(s, axis=-1, keepdims=True))
        alpha = jnp.exp(m_prev - m_new)
        p = jnp.exp(s - m_new)
        l_ref[...] = alpha * l_ref[...] + jnp.sum(p, axis=-1, keepdims=True)
        acc_ref[...] = alpha * acc_ref[...] + jnp.einsum(
            'hqk,hkd->hqd', p.astype(v.dtype), v,
            preferred_element_type=jnp.float32)
        m_ref[...] = m_new

    @pl.when(ki == pl.num_programs(2) - 1)
    def _finalize():
        num_heads, dh = q_ref.shape[1], q_ref.shape[3]
        out = acc_ref[...] * pl.reciprocal(l_ref[...])      # (H, TQ, dh)
        # Per-head writes into static lane slices of the (TQ, D) output tile.
        for h in range(num_heads):
            o_ref[0, :, h * dh:(h + 1) * dh] = out[h].astype(o_ref.dtype)


# ----------- kernel 3: Wo + residual + RMSNorm2 + SwiGLU (d_ff tiled) -------
def _ffn_kernel(x_ref, attn_ref, wo_ref, g2_ref, w1_ref, w3_ref, w2_ref,
                out_ref, y_ref, yn_ref, acc_ref):
    fi = pl.program_id(2)

    @pl.when(fi == 0)
    def _init():
        attn = attn_ref[0].astype(wo_ref.dtype)
        y = x_ref[0].astype(jnp.float32) + jnp.dot(
            attn, wo_ref[...], preferred_element_type=jnp.float32)
        y_ref[...] = y
        yn_ref[...] = _rmsnorm_f32(y, g2_ref[...])
        acc_ref[...] = jnp.zeros(acc_ref.shape, jnp.float32)

    yn = yn_ref[...].astype(w1_ref.dtype)
    h1 = jnp.dot(yn, w1_ref[...], preferred_element_type=jnp.float32)   # (TS, TF)
    h3 = jnp.dot(yn, w3_ref[...], preferred_element_type=jnp.float32)
    hidden = (h1 * jax.nn.sigmoid(h1)) * h3
    acc_ref[...] += jnp.dot(hidden.astype(w2_ref.dtype), w2_ref[...],
                            preferred_element_type=jnp.float32)         # (TS, D)

    @pl.when(fi == pl.num_programs(2) - 1)
    def _finalize():
        out_ref[0] = (y_ref[...] + acc_ref[...]).astype(out_ref.dtype)


# ------------------------------- wrapper ------------------------------------
def _pick_tile(n, target):
    return target if (n > target and n % target == 0) else n


def transformer_block(x, params, num_heads, rope_theta=10000.0,
                      seq_tile=None, ff_tile=None):
    B, S, D = x.shape
    d_ff = params["w1"].shape[0]
    dh = D // num_heads
    half = dh // 2
    assert D % num_heads == 0 and dh % 2 == 0

    ts = seq_tile if seq_tile is not None else _pick_tile(S, 256)
    tf = ff_tile if ff_tile is not None else _pick_tile(d_ff, 512)
    assert S % ts == 0 and d_ff % tf == 0

    f32 = jnp.float32
    g1 = params["g1"].reshape(1, D).astype(f32)
    g2 = params["g2"].reshape(1, D).astype(f32)

    # Pre-transpose all weights to (in, out) layout (no on-chip transposes).
    wqT, wkT = params["wq"].T, params["wk"].T
    wvT, woT = params["wv"].T, params["wo"].T
    w1T, w3T = params["w1"].T, params["w3"].T        # (D, d_ff)
    w2T = params["w2"].T                             # (d_ff, D)

    # Per-head column permutation: interleaved-pair RoPE -> split-half RoPE.
    # Applying the same orthogonal permutation to Q and K leaves scores exact.
    j = jnp.arange(dh)
    src = jnp.where(j < half, 2 * j, 2 * (j - half) + 1)
    perm = (jnp.arange(num_heads)[:, None] * dh + src[None, :]).reshape(-1)
    wqT = wqT[:, perm]
    wkT = wkT[:, perm]

    # cos/sin tables: (S, dh//2) instead of (S, dh, dh) rotation matrices.
    inv_freq = 1.0 / (rope_theta ** (jnp.arange(half, dtype=f32) * 2.0 / dh))
    ang = jnp.arange(S, dtype=f32)[:, None] * inv_freq[None, :]
    cos, sin = jnp.cos(ang), jnp.sin(ang)

    # -------- kernel 1: q, k, v in (B, H, S, dh), RoPE + scale applied ------
    qkv_shape = jax.ShapeDtypeStruct((B, num_heads, S, dh), x.dtype)
    head_spec = pl.BlockSpec((1, num_heads, ts, dh), lambda b, si: (b, 0, si, 0))
    q, k, v = pl.pallas_call(
        functools.partial(_qkv_rope_kernel, num_heads=num_heads),
        out_shape=(qkv_shape, qkv_shape, qkv_shape),
        grid=(B, S // ts),
        in_specs=[
            pl.BlockSpec((1, ts, D), lambda b, si: (b, si, 0)),      # x
            pl.BlockSpec((1, D), lambda b, si: (0, 0)),              # g1
            pl.BlockSpec((D, D), lambda b, si: (0, 0)),              # WqT (perm)
            pl.BlockSpec((D, D), lambda b, si: (0, 0)),              # WkT (perm)
            pl.BlockSpec((D, D), lambda b, si: (0, 0)),              # WvT
            pl.BlockSpec((ts, half), lambda b, si: (si, 0)),         # cos
            pl.BlockSpec((ts, half), lambda b, si: (si, 0)),         # sin
        ],
        out_specs=(head_spec, head_spec, head_spec),
        compiler_params=pltpu.CompilerParams(
            dimension_semantics=("parallel", "parallel")),
    )(x, g1, wqT, wkT, wvT, cos, sin)

    # -------- kernel 2: causal flash attention, online softmax over KV ------
    attn = pl.pallas_call(
        functools.partial(_flash_attn_kernel, tq=ts, tk=ts),
        out_shape=jax.ShapeDtypeStruct((B, S, D), x.dtype),
        grid=(B, S // ts, S // ts),
        in_specs=[
            pl.BlockSpec((1, num_heads, ts, dh), lambda b, qi, ki: (b, 0, qi, 0)),
            pl.BlockSpec((1, num_heads, ts, dh), lambda b, qi, ki: (b, 0, ki, 0)),
            pl.BlockSpec((1, num_heads, ts, dh), lambda b, qi, ki: (b, 0, ki, 0)),
        ],
        out_specs=pl.BlockSpec((1, ts, D), lambda b, qi, ki: (b, qi, 0)),
        scratch_shapes=[
            pltpu.VMEM((num_heads, ts, 1), jnp.float32),   # m
            pltpu.VMEM((num_heads, ts, 1), jnp.float32),   # l
            pltpu.VMEM((num_heads, ts, dh), jnp.float32),  # acc
        ],
        compiler_params=pltpu.CompilerParams(
            dimension_semantics=("parallel", "parallel", "arbitrary")),
    )(q, k, v)

    # -------- kernel 3: Wo + residual + RMSNorm2 + SwiGLU (d_ff tiled) ------
    out = pl.pallas_call(
        _ffn_kernel,
        out_shape=jax.ShapeDtypeStruct((B, S, D), x.dtype),
        grid=(B, S // ts, d_ff // tf),
        in_specs=[
            pl.BlockSpec((1, ts, D), lambda b, si, fi: (b, si, 0)),  # x
            pl.BlockSpec((1, ts, D), lambda b, si, fi: (b, si, 0)),  # attn
            pl.BlockSpec((D, D), lambda b, si, fi: (0, 0)),          # WoT
            pl.BlockSpec((1, D), lambda b, si, fi: (0, 0)),          # g2
            pl.BlockSpec((D, tf), lambda b, si, fi: (0, fi)),        # W1T tile
            pl.BlockSpec((D, tf), lambda b, si, fi: (0, fi)),        # W3T tile
            pl.BlockSpec((tf, D), lambda b, si, fi: (fi, 0)),        # W2T tile
        ],
        out_specs=pl.BlockSpec((1, ts, D), lambda b, si, fi: (b, si, 0)),
        scratch_shapes=[
            pltpu.VMEM((ts, D), jnp.float32),   # y  (attn residual)
            pltpu.VMEM((ts, D), jnp.float32),   # yn (RMSNorm2(y))
            pltpu.VMEM((ts, D), jnp.float32),   # FFN accumulator
        ],
        compiler_params=pltpu.CompilerParams(
            dimension_semantics=("parallel", "parallel", "arbitrary")),
    )(x, attn, woT, g2, w1T, w3T, w2T)
    return out


# ------------------------- pure-JAX reference (for checking) ----------------
def reference_block(x, params, num_heads, rope_theta):
    B, S, D = x.shape
    dh = D // num_heads
    half = dh // 2

    def rms(v, g):
        return v * jax.lax.rsqrt(jnp.mean(v * v, -1, keepdims=True) + EPS) * g

    g1 = params["g1"].reshape(1, D)
    g2 = params["g2"].reshape(1, D)
    xn = rms(x, g1)
    q = (xn @ params["wq"].T).reshape(B, S, num_heads, dh)
    k = (xn @ params["wk"].T).reshape(B, S, num_heads, dh)
    v = (xn @ params["wv"].T).reshape(B, S, num_heads, dh)

    inv_freq = 1.0 / (rope_theta ** (jnp.arange(half, dtype=jnp.float32) * 2.0 / dh))
    ang = jnp.arange(S, dtype=jnp.float32)[:, None] * inv_freq[None, :]
    cos = jnp.cos(ang)[None, :, None, :]
    sin = jnp.sin(ang)[None, :, None, :]

    def rope(t):  # interleaved pairs (2i, 2i+1)
        te, to = t[..., 0::2], t[..., 1::2]
        return jnp.stack([te * cos - to * sin, to * cos + te * sin],
                         axis=-1).reshape(t.shape)

    q, k = rope(q), rope(k)
    scores = jnp.einsum('bqhd,bkhd->bhqk', q, k) / jnp.sqrt(jnp.float32(dh))
    mask = jnp.tril(jnp.ones((S, S), bool))
    scores = jnp.where(mask, scores, -1e30)
    p = jax.nn.softmax(scores, axis=-1)
    o = jnp.einsum('bhqk,bkhd->bqhd', p, v).reshape(B, S, D)
    y = x + o @ params["wo"].T
    yn = rms(y, g2)
    h1 = yn @ params["w1"].T
    h3 = yn @ params["w3"].T
    return y + ((h1 * jax.nn.sigmoid(h1)) * h3) @ params["w2"].T


if __name__ == "__main__":
    # Small shapes; tiles chosen so the KV-tile loop, causal-skip path and the
    # d_ff-tile accumulation are all exercised (2 seq tiles, 2 d_ff tiles).
    B, S = 2, 16
    d_model, num_heads, d_ff = 32, 4, 256
    rope_theta = 10000.0

    key = jax.random.PRNGKey(0)
    ks = jax.random.split(key, 10)
    init = lambda k, shape: (0.1 * jax.random.normal(k, shape)).astype(jnp.float32)

    params = {
        "g1": (1.0 + 0.05 * jax.random.normal(ks[0], (d_model,))).astype(jnp.float32),
        "g2": (1.0 + 0.05 * jax.random.normal(ks[1], (d_model,))).astype(jnp.float32),
        "wq": init(ks[2], (d_model, d_model)),
        "wk": init(ks[3], (d_model, d_model)),
        "wv": init(ks[4], (d_model, d_model)),
        "wo": init(ks[5], (d_model, d_model)),
        "w1": init(ks[6], (d_ff, d_model)),
        "w2": init(ks[7], (d_model, d_ff)),
        "w3": init(ks[8], (d_ff, d_model)),
    }
    x = jax.random.normal(ks[9], (B, S, d_model), jnp.float32)

    out = transformer_block(x, params, num_heads, rope_theta,
                            seq_tile=8, ff_tile=128)
    out = jax.block_until_ready(out)

    ref = reference_block(x, params, num_heads, rope_theta)
    assert out.shape == (B, S, d_model)
    assert jnp.all(jnp.isfinite(out))
    assert jnp.allclose(out, ref, rtol=2e-4, atol=2e-4)
    print("KERNEL_OK")
</pallas_src>

<mosaic_0001>
module attributes {stable_mosaic.version = 11 : i64} {
  func.func @_qkv_rope_kernel(%arg0: i32, %arg1: i32, %arg2: memref<1x8x32xf32, #tpu.memory_space<vmem>>, %arg3: memref<1x32xf32, #tpu.memory_space<vmem>>, %arg4: memref<32x32xf32, #tpu.memory_space<vmem>>, %arg5: memref<32x32xf32, #tpu.memory_space<vmem>>, %arg6: memref<32x32xf32, #tpu.memory_space<vmem>>, %arg7: memref<8x4xf32, #tpu.memory_space<vmem>>, %arg8: memref<8x4xf32, #tpu.memory_space<vmem>>, %arg9: memref<1x4x8x8xf32, #tpu.memory_space<vmem>>, %arg10: memref<1x4x8x8xf32, #tpu.memory_space<vmem>>, %arg11: memref<1x4x8x8xf32, #tpu.memory_space<vmem>>) attributes {dimension_semantics = [#tpu.dimension_semantics<parallel>, #tpu.dimension_semantics<parallel>], iteration_bounds = array<i64: 2, 2>, scalar_prefetch = 0 : i64, scratch_operands = 0 : i64, tpu.core_type = #tpu.core_type<tc>, window_params = [{transform_indices = @transform_0, window_bounds = array<i64: 1, 8, 32>}, {pipeline_mode = #tpu.pipeline_mode<synchronous>, transform_indices = @transform_1, window_bounds = array<i64: 1, 32>}, {pipeline_mode = #tpu.pipeline_mode<synchronous>, transform_indices = @transform_2, window_bounds = array<i64: 32, 32>}, {pipeline_mode = #tpu.pipeline_mode<synchronous>, transform_indices = @transform_3, window_bounds = array<i64: 32, 32>}, {pipeline_mode = #tpu.pipeline_mode<synchronous>, transform_indices = @transform_4, window_bounds = array<i64: 32, 32>}, {transform_indices = @transform_5, window_bounds = array<i64: 8, 4>}, {transform_indices = @transform_6, window_bounds = array<i64: 8, 4>}, {transform_indices = @transform_7, window_bounds = array<i64: 1, 4, 8, 8>}, {transform_indices = @transform_8, window_bounds = array<i64: 1, 4, 8, 8>}, {transform_indices = @transform_9, window_bounds = array<i64: 1, 4, 8, 8>}]} {
    %c0 = arith.constant 0 : index
    %c0_0 = arith.constant 0 : index
    %c0_1 = arith.constant 0 : index
    %0 = vector.load %arg2[%c0, %c0_0, %c0_1] : memref<1x8x32xf32, #tpu.memory_space<vmem>>, vector<1x8x32xf32>
    %1 = vector.shape_cast %0 : vector<1x8x32xf32> to vector<8x32xf32>
    %c0_2 = arith.constant 0 : index
    %c0_3 = arith.constant 0 : index
    %2 = vector.load %arg3[%c0_2, %c0_3] : memref<1x32xf32, #tpu.memory_space<vmem>>, vector<1x32xf32>
    %3 = arith.mulf %1, %1 : vector<8x32xf32>
    %cst = arith.constant dense<0.000000e+00> : vector<8xf32>
    %4 = vector.multi_reduction <add>, %3, %cst [1] : vector<8x32xf32> to vector<8xf32>
    %5 = vector.shape_cast %4 : vector<8xf32> to vector<8x1xf32>
    %cst_4 = arith.constant 3.200000e+01 : f32
    %6 = vector.broadcast %cst_4 : f32 to vector<8x1xf32>
    %7 = arith.divf %5, %6 : vector<8x1xf32>
    %cst_5 = arith.constant 9.99999974E-6 : f32
    %8 = vector.broadcast %cst_5 : f32 to vector<8x1xf32>
    %9 = arith.addf %7, %8 : vector<8x1xf32>
    %10 = math.rsqrt %9 : vector<8x1xf32>
    %11 = vector.broadcast %10 : vector<8x1xf32> to vector<8x32xf32>
    %12 = arith.mulf %1, %11 : vector<8x32xf32>
    %13 = vector.broadcast %2 : vector<1x32xf32> to vector<8x32xf32>
    %14 = arith.mulf %12, %13 : vector<8x32xf32>
    %cst_6 = arith.constant 8.000000e+00 : f32
    %15 = math.sqrt %cst_6 : f32
    %cst_7 = arith.constant 1.000000e+00 : f32
    %16 = arith.divf %cst_7, %15 : f32
    %c0_8 = arith.constant 0 : index
    %c0_9 = arith.constant 0 : index
    %17 = vector.load %arg4[%c0_8, %c0_9] : memref<32x32xf32, #tpu.memory_space<vmem>>, vector<32x32xf32>
    %cst_10 = arith.constant dense<0.000000e+00> : vector<8x32xf32>
    %18 = tpu.matmul %14, %17, %cst_10 {dimension_numbers = #tpu.dot_dimension_numbers<[1], [0], [0], [1], [0, 0, 1, 1], [], []>} : vector<8x32xf32>, vector<32x32xf32>, vector<8x32xf32> -> vector<8x32xf32>
    %19 = vector.broadcast %16 : f32 to vector<8x32xf32>
    %20 = arith.mulf %18, %19 : vector<8x32xf32>
    %c0_11 = arith.constant 0 : index
    %c0_12 = arith.constant 0 : index
    %21 = vector.load %arg5[%c0_11, %c0_12] : memref<32x32xf32, #tpu.memory_space<vmem>>, vector<32x32xf32>
    %cst_13 = arith.constant dense<0.000000e+00> : vector<8x32xf32>
    %22 = tpu.matmul %14, %21, %cst_13 {dimension_numbers = #tpu.dot_dimension_numbers<[1], [0], [0], [1], [0, 0, 1, 1], [], []>} : vector<8x32xf32>, vector<32x32xf32>, vector<8x32xf32> -> vector<8x32xf32>
    %c0_14 = arith.constant 0 : index
    %c0_15 = arith.constant 0 : index
    %23 = vector.load %arg6[%c0_14, %c0_15] : memref<32x32xf32, #tpu.memory_space<vmem>>, vector<32x32xf32>
    %cst_16 = arith.constant dense<0.000000e+00> : vector<8x32xf32>
    %24 = tpu.matmul %14, %23, %cst_16 {dimension_numbers = #tpu.dot_dimension_numbers<[1], [0], [0], [1], [0, 0, 1, 1], [], []>} : vector<8x32xf32>, vector<32x32xf32>, vector<8x32xf32> -> vector<8x32xf32>
    %c0_17 = arith.constant 0 : index
    %c0_18 = arith.constant 0 : index
    %25 = vector.load %arg7[%c0_17, %c0_18] : memref<8x4xf32, #tpu.memory_space<vmem>>, vector<8x4xf32>
    %c0_19 = arith.constant 0 : index
    %c0_20 = arith.constant 0 : index
    %26 = vector.load %arg8[%c0_19, %c0_20] : memref<8x4xf32, #tpu.memory_space<vmem>>, vector<8x4xf32>
    %27 = vector.extract_strided_slice %20 {offsets = [0, 0], sizes = [8, 4], strides = [1, 1]} : vector<8x32xf32> to vector<8x4xf32>
    %28 = vector.extract_strided_slice %20 {offsets = [0, 4], sizes = [8, 4], strides = [1, 1]} : vector<8x32xf32> to vector<8x4xf32>
    %29 = vector.extract_strided_slice %22 {offsets = [0, 0], sizes = [8, 4], strides = [1, 1]} : vector<8x32xf32> to vector<8x4xf32>
    %30 = vector.extract_strided_slice %22 {offsets = [0, 4], sizes = [8, 4], strides = [1, 1]} : vector<8x32xf32> to vector<8x4xf32>
    %31 = arith.mulf %27, %25 : vector<8x4xf32>
    %32 = arith.mulf %28, %26 : vector<8x4xf32>
    %33 = arith.subf %31, %32 : vector<8x4xf32>
    %34 = arith.mulf %28, %25 : vector<8x4xf32>
    %35 = arith.mulf %27, %26 : vector<8x4xf32>
    %36 = arith.addf %34, %35 : vector<8x4xf32>
    %37 = tpu.concatenate %33, %36 in 1 : vector<8x4xf32>, vector<8x4xf32> -> vector<8x8xf32>
    %c0_21 = arith.constant 0 : index
    %c0_22 = arith.constant 0 : index
    %c0_23 = arith.constant 0 : index
    %c0_24 = arith.constant 0 : index
    %38 = vector.load %arg9[%c0_21, %c0_22, %c0_23, %c0_24] : memref<1x4x8x8xf32, #tpu.memory_space<vmem>>, vector<1x1x8x8xf32>
    %39 = vector.shape_cast %38 : vector<1x1x8x8xf32> to vector<8x8xf32>
    %40 = vector.shape_cast %37 : vector<8x8xf32> to vector<1x1x8x8xf32>
    tpu.vector_store %arg9[%c0_21, %c0_22, %c0_23, %c0_24], %40 {strides = array<i32>} : memref<1x4x8x8xf32, #tpu.memory_space<vmem>>, vector<1x1x8x8xf32>,
    %41 = arith.mulf %29, %25 : vector<8x4xf32>
    %42 = arith.mulf %30, %26 : vector<8x4xf32>
    %43 = arith.subf %41, %42 : vector<8x4xf32>
    %44 = arith.mulf %30, %25 : vector<8x4xf32>
    %45 = arith.mulf %29, %26 : vector<8x4xf32>
    %46 = arith.addf %44, %45 : vector<8x4xf32>
    %47 = tpu.concatenate %43, %46 in 1 : vector<8x4xf32>, vector<8x4xf32> -> vector<8x8xf32>
    %c0_25 = arith.constant 0 : index
    %c0_26 = arith.constant 0 : index
    %c0_27 = arith.constant 0 : index
    %c0_28 = arith.constant 0 : index
    %48 = vector.load %arg10[%c0_25, %c0_26, %c0_27, %c0_28] : memref<1x4x8x8xf32, #tpu.memory_space<vmem>>, vector<1x1x8x8xf32>
    %49 = vector.shape_cast %48 : vector<1x1x8x8xf32> to vector<8x8xf32>
    %50 = vector.shape_cast %47 : vector<8x8xf32> to vector<1x1x8x8xf32>
    tpu.vector_store %arg10[%c0_25, %c0_26, %c0_27, %c0_28], %50 {strides = array<i32>} : memref<1x4x8x8xf32, #tpu.memory_space<vmem>>, vector<1x1x8x8xf32>,
    %51 = vector.extract_strided_slice %24 {offsets = [0, 0], sizes = [8, 8], strides = [1, 1]} : vector<8x32xf32> to vector<8x8xf32>
    %c0_29 = arith.constant 0 : index
    %c0_30 = arith.constant 0 : index
    %c0_31 = arith.constant 0 : index
    %c0_32 = arith.constant 0 : index
    %52 = vector.load %arg11[%c0_29, %c0_30, %c0_31, %c0_32] : memref<1x4x8x8xf32, #tpu.memory_space<vmem>>, vector<1x1x8x8xf32>
    %53 = vector.shape_cast %52 : vector<1x1x8x8xf32> to vector<8x8xf32>
    %54 = vector.shape_cast %51 : vector<8x8xf32> to vector<1x1x8x8xf32>
    tpu.vector_store %arg11[%c0_29, %c0_30, %c0_31, %c0_32], %54 {strides = array<i32>} : memref<1x4x8x8xf32, #tpu.memory_space<vmem>>, vector<1x1x8x8xf32>,
    %55 = vector.extract_strided_slice %20 {offsets = [0, 8], sizes = [8, 4], strides = [1, 1]} : vector<8x32xf32> to vector<8x4xf32>
    %56 = vector.extract_strided_slice %20 {offsets = [0, 12], sizes = [8, 4], strides = [1, 1]} : vector<8x32xf32> to vector<8x4xf32>
    %57 = vector.extract_strided_slice %22 {offsets = [0, 8], sizes = [8, 4], strides = [1, 1]} : vector<8x32xf32> to vector<8x4xf32>
    %58 = vector.extract_strided_slice %22 {offsets = [0, 12], sizes = [8, 4], strides = [1, 1]} : vector<8x32xf32> to vector<8x4xf32>
    %59 = arith.mulf %55, %25 : vector<8x4xf32>
    %60 = arith.mulf %56, %26 : vector<8x4xf32>
    %61 = arith.subf %59, %60 : vector<8x4xf32>
    %62 = arith.mulf %56, %25 : vector<8x4xf32>
    %63 = arith.mulf %55, %26 : vector<8x4xf32>
    %64 = arith.addf %62, %63 : vector<8x4xf32>
    %65 = tpu.concatenate %61, %64 in 1 : vector<8x4xf32>, vector<8x4xf32> -> vector<8x8xf32>
    %c0_33 = arith.constant 0 : index
    %c1 = arith.constant 1 : index
    %c0_34 = arith.constant 0 : index
    %c0_35 = arith.constant 0 : index
    %66 = vector.load %arg9[%c0_33, %c1, %c0_34, %c0_35] : memref<1x4x8x8xf32, #tpu.memory_space<vmem>>, vector<1x1x8x8xf32>
    %67 = vector.shape_cast %66 : vector<1x1x8x8xf32> to vector<8x8xf32>
    %68 = vector.shape_cast %65 : vector<8x8xf32> to vector<1x1x8x8xf32>
    tpu.vector_store %arg9[%c0_33, %c1, %c0_34, %c0_35], %68 {strides = array<i32>} : memref<1x4x8x8xf32, #tpu.memory_space<vmem>>, vector<1x1x8x8xf32>,
    %69 = arith.mulf %57, %25 : vector<8x4xf32>
    %70 = arith.mulf %58, %26 : vector<8x4xf32>
    %71 = arith.subf %69, %70 : vector<8x4xf32>
    %72 = arith.mulf %58, %25 : vector<8x4xf32>
    %73 = arith.mulf %57, %26 : vector<8x4xf32>
    %74 = arith.addf %72, %73 : vector<8x4xf32>
    %75 = tpu.concatenate %71, %74 in 1 : vector<8x4xf32>, vector<8x4xf32> -> vector<8x8xf32>
    %c0_36 = arith.constant 0 : index
    %c1_37 = arith.constant 1 : index
    %c0_38 = arith.constant 0 : index
    %c0_39 = arith.constant 0 : index
    %76 = vector.load %arg10[%c0_36, %c1_37, %c0_38, %c0_39] : memref<1x4x8x8xf32, #tpu.memory_space<vmem>>, vector<1x1x8x8xf32>
    %77 = vector.shape_cast %76 : vector<1x1x8x8xf32> to vector<8x8xf32>
    %78 = vector.shape_cast %75 : vector<8x8xf32> to vector<1x1x8x8xf32>
    tpu.vector_store %arg10[%c0_36, %c1_37, %c0_38, %c0_39], %78 {strides = array<i32>} : memref<1x4x8x8xf32, #tpu.memory_space<vmem>>, vector<1x1x8x8xf32>,
    %79 = vector.extract_strided_slice %24 {offsets = [0, 8], sizes = [8, 8], strides = [1, 1]} : vector<8x32xf32> to vector<8x8xf32>
    %c0_40 = arith.constant 0 : index
    %c1_41 = arith.constant 1 : index
    %c0_42 = arith.constant 0 : index
    %c0_43 = arith.constant 0 : index
    %80 = vector.load %arg11[%c0_40, %c1_41, %c0_42, %c0_43] : memref<1x4x8x8xf32, #tpu.memory_space<vmem>>, vector<1x1x8x8xf32>
    %81 = vector.shape_cast %80 : vector<1x1x8x8xf32> to vector<8x8xf32>
    %82 = vector.shape_cast %79 : vector<8x8xf32> to vector<1x1x8x8xf32>
    tpu.vector_store %arg11[%c0_40, %c1_41, %c0_42, %c0_43], %82 {strides = array<i32>} : memref<1x4x8x8xf32, #tpu.memory_space<vmem>>, vector<1x1x8x8xf32>,
    %83 = vector.extract_strided_slice %20 {offsets = [0, 16], sizes = [8, 4], strides = [1, 1]} : vector<8x32xf32> to vector<8x4xf32>
    %84 = vector.extract_strided_slice %20 {offsets = [0, 20], sizes = [8, 4], strides = [1, 1]} : vector<8x32xf32> to vector<8x4xf32>
    %85 = vector.extract_strided_slice %22 {offsets = [0, 16], sizes = [8, 4], strides = [1, 1]} : vector<8x32xf32> to vector<8x4xf32>
    %86 = vector.extract_strided_slice %22 {offsets = [0, 20], sizes = [8, 4], strides = [1, 1]} : vector<8x32xf32> to vector<8x4xf32>
    %87 = arith.mulf %83, %25 : vector<8x4xf32>
    %88 = arith.mulf %84, %26 : vector<8x4xf32>
    %89 = arith.subf %87, %88 : vector<8x4xf32>
    %90 = arith.mulf %84, %25 : vector<8x4xf32>
    %91 = arith.mulf %83, %26 : vector<8x4xf32>
    %92 = arith.addf %90, %91 : vector<8x4xf32>
    %93 = tpu.concatenate %89, %92 in 1 : vector<8x4xf32>, vector<8x4xf32> -> vector<8x8xf32>
    %c0_44 = arith.constant 0 : index
    %c2 = arith.constant 2 : index
    %c0_45 = arith.constant 0 : index
    %c0_46 = arith.constant 0 : index
    %94 = vector.load %arg9[%c0_44, %c2, %c0_45, %c0_46] : memref<1x4x8x8xf32, #tpu.memory_space<vmem>>, vector<1x1x8x8xf32>
    %95 = vector.shape_cast %94 : vector<1x1x8x8xf32> to vector<8x8xf32>
    %96 = vector.shape_cast %93 : vector<8x8xf32> to vector<1x1x8x8xf32>
    tpu.vector_store %arg9[%c0_44, %c2, %c0_45, %c0_46], %96 {strides = array<i32>} : memref<1x4x8x8xf32, #tpu.memory_space<vmem>>, vector<1x1x8x8xf32>,
    %97 = arith.mulf %85, %25 : vector<8x4xf32>
    %98 = arith.mulf %86, %26 : vector<8x4xf32>
    %99 = arith.subf %97, %98 : vector<8x4xf32>
    %100 = arith.mulf %86, %25 : vector<8x4xf32>
    %101 = arith.mulf %85, %26 : vector<8x4xf32>
    %102 = arith.addf %100, %101 : vector<8x4xf32>
    %103 = tpu.concatenate %99, %102 in 1 : vector<8x4xf32>, vector<8x4xf32> -> vector<8x8xf32>
    %c0_47 = arith.constant 0 : index
    %c2_48 = arith.constant 2 : index
    %c0_49 = arith.constant 0 : index
    %c0_50 = arith.constant 0 : index
    %104 = vector.load %arg10[%c0_47, %c2_48, %c0_49, %c0_50] : memref<1x4x8x8xf32, #tpu.memory_space<vmem>>, vector<1x1x8x8xf32>
    %105 = vector.shape_cast %104 : vector<1x1x8x8xf32> to vector<8x8xf32>
    %106 = vector.shape_cast %103 : vector<8x8xf32> to vector<1x1x8x8xf32>
    tpu.vector_store %arg10[%c0_47, %c2_48, %c0_49, %c0_50], %106 {strides = array<i32>} : memref<1x4x8x8xf32, #tpu.memory_space<vmem>>, vector<1x1x8x8xf32>,
    %107 = vector.extract_strided_slice %24 {offsets = [0, 16], sizes = [8, 8], strides = [1, 1]} : vector<8x32xf32> to vector<8x8xf32>
    %c0_51 = arith.constant 0 : index
    %c2_52 = arith.constant 2 : index
    %c0_53 = arith.constant 0 : index
    %c0_54 = arith.constant 0 : index
    %108 = vector.load %arg11[%c0_51, %c2_52, %c0_53, %c0_54] : memref<1x4x8x8xf32, #tpu.memory_space<vmem>>, vector<1x1x8x8xf32>
    %109 = vector.shape_cast %108 : vector<1x1x8x8xf32> to vector<8x8xf32>
    %110 = vector.shape_cast %107 : vector<8x8xf32> to vector<1x1x8x8xf32>
    tpu.vector_store %arg11[%c0_51, %c2_52, %c0_53, %c0_54], %110 {strides = array<i32>} : memref<1x4x8x8xf32, #tpu.memory_space<vmem>>, vector<1x1x8x8xf32>,
    %111 = vector.extract_strided_slice %20 {offsets = [0, 24], sizes = [8, 4], strides = [1, 1]} : vector<8x32xf32> to vector<8x4xf32>
    %112 = vector.extract_strided_slice %20 {offsets = [0, 28], sizes = [8, 4], strides = [1, 1]} : vector<8x32xf32> to vector<8x4xf32>
    %113 = vector.extract_strided_slice %22 {offsets = [0, 24], sizes = [8, 4], strides = [1, 1]} : vector<8x32xf32> to vector<8x4xf32>
    %114 = vector.extract_strided_slice %22 {offsets = [0, 28], sizes = [8, 4], strides = [1, 1]} : vector<8x32xf32> to vector<8x4xf32>
    %115 = arith.mulf %111, %25 : vector<8x4xf32>
    %116 = arith.mulf %112, %26 : vector<8x4xf32>
    %117 = arith.subf %115, %116 : vector<8x4xf32>
    %118 = arith.mulf %112, %25 : vector<8x4xf32>
    %119 = arith.mulf %111, %26 : vector<8x4xf32>
    %120 = arith.addf %118, %119 : vector<8x4xf32>
    %121 = tpu.concatenate %117, %120 in 1 : vector<8x4xf32>, vector<8x4xf32> -> vector<8x8xf32>
    %c0_55 = arith.constant 0 : index
    %c3 = arith.constant 3 : index
    %c0_56 = arith.constant 0 : index
    %c0_57 = arith.constant 0 : index
    %122 = vector.load %arg9[%c0_55, %c3, %c0_56, %c0_57] : memref<1x4x8x8xf32, #tpu.memory_space<vmem>>, vector<1x1x8x8xf32>
    %123 = vector.shape_cast %122 : vector<1x1x8x8xf32> to vector<8x8xf32>
    %124 = vector.shape_cast %121 : vector<8x8xf32> to vector<1x1x8x8xf32>
    tpu.vector_store %arg9[%c0_55, %c3, %c0_56, %c0_57], %124 {strides = array<i32>} : memref<1x4x8x8xf32, #tpu.memory_space<vmem>>, vector<1x1x8x8xf32>,
    %125 = arith.mulf %113, %25 : vector<8x4xf32>
    %126 = arith.mulf %114, %26 : vector<8x4xf32>
    %127 = arith.subf %125, %126 : vector<8x4xf32>
    %128 = arith.mulf %114, %25 : vector<8x4xf32>
    %129 = arith.mulf %113, %26 : vector<8x4xf32>
    %130 = arith.addf %128, %129 : vector<8x4xf32>
    %131 = tpu.concatenate %127, %130 in 1 : vector<8x4xf32>, vector<8x4xf32> -> vector<8x8xf32>
    %c0_58 = arith.constant 0 : index
    %c3_59 = arith.constant 3 : index
    %c0_60 = arith.constant 0 : index
    %c0_61 = arith.constant 0 : index
    %132 = vector.load %arg10[%c0_58, %c3_59, %c0_60, %c0_61] : memref<1x4x8x8xf32, #tpu.memory_space<vmem>>, vector<1x1x8x8xf32>
    %133 = vector.shape_cast %132 : vector<1x1x8x8xf32> to vector<8x8xf32>
    %134 = vector.shape_cast %131 : vector<8x8xf32> to vector<1x1x8x8xf32>
    tpu.vector_store %arg10[%c0_58, %c3_59, %c0_60, %c0_61], %134 {strides = array<i32>} : memref<1x4x8x8xf32, #tpu.memory_space<vmem>>, vector<1x1x8x8xf32>,
    %135 = vector.extract_strided_slice %24 {offsets = [0, 24], sizes = [8, 8], strides = [1, 1]} : vector<8x32xf32> to vector<8x8xf32>
    %c0_62 = arith.constant 0 : index
    %c3_63 = arith.constant 3 : index
    %c0_64 = arith.constant 0 : index
    %c0_65 = arith.constant 0 : index
    %136 = vector.load %arg11[%c0_62, %c3_63, %c0_64, %c0_65] : memref<1x4x8x8xf32, #tpu.memory_space<vmem>>, vector<1x1x8x8xf32>
    %137 = vector.shape_cast %136 : vector<1x1x8x8xf32> to vector<8x8xf32>
    %138 = vector.shape_cast %135 : vector<8x8xf32> to vector<1x1x8x8xf32>
    tpu.vector_store %arg11[%c0_62, %c3_63, %c0_64, %c0_65], %138 {strides = array<i32>} : memref<1x4x8x8xf32, #tpu.memory_space<vmem>>, vector<1x1x8x8xf32>,
    return
  }
  func.func @transform_0(%arg0: i32, %arg1: i32) -> (i32, i32, i32) {
    %c0_i32 = arith.constant 0 : i32
    %c0_i32_0 = arith.constant 0 : i32
    return %arg0, %arg1, %c0_i32 : i32, i32, i32
  }
  func.func @transform_1(%arg0: i32, %arg1: i32) -> (i32, i32) {
    %c0_i32 = arith.constant 0 : i32
    %c0_i32_0 = arith.constant 0 : i32
    %c0_i32_1 = arith.constant 0 : i32
    return %c0_i32, %c0_i32_0 : i32, i32
  }
  func.func @transform_2(%arg0: i32, %arg1: i32) -> (i32, i32) {
    %c0_i32 = arith.constant 0 : i32
    %c0_i32_0 = arith.constant 0 : i32
    %c0_i32_1 = arith.constant 0 : i32
    return %c0_i32, %c0_i32_0 : i32, i32
  }
  func.func @transform_3(%arg0: i32, %arg1: i32) -> (i32, i32) {
    %c0_i32 = arith.constant 0 : i32
    %c0_i32_0 = arith.constant 0 : i32
    %c0_i32_1 = arith.constant 0 : i32
    return %c0_i32, %c0_i32_0 : i32, i32
  }
  func.func @transform_4(%arg0: i32, %arg1: i32) -> (i32, i32) {
    %c0_i32 = arith.constant 0 : i32
    %c0_i32_0 = arith.constant 0 : i32
    %c0_i32_1 = arith.constant 0 : i32
    return %c0_i32, %c0_i32_0 : i32, i32
  }
  func.func @transform_5(%arg0: i32, %arg1: i32) -> (i32, i32) {
    %c0_i32 = arith.constant 0 : i32
    %c0_i32_0 = arith.constant 0 : i32
    return %arg1, %c0_i32 : i32, i32
  }
  func.func @transform_6(%arg0: i32, %arg1: i32) -> (i32, i32) {
    %c0_i32 = arith.constant 0 : i32
    %c0_i32_0 = arith.constant 0 : i32
    return %arg1, %c0_i32 : i32, i32
  }
  func.func @transform_7(%arg0: i32, %arg1: i32) -> (i32, i32, i32, i32) {
    %c0_i32 = arith.constant 0 : i32
    %c0_i32_0 = arith.constant 0 : i32
    %c0_i32_1 = arith.constant 0 : i32
    return %arg0, %c0_i32, %arg1, %c0_i32_0 : i32, i32, i32, i32
  }
  func.func @transform_8(%arg0: i32, %arg1: i32) -> (i32, i32, i32, i32) {
    %c0_i32 = arith.constant 0 : i32
    %c0_i32_0 = arith.constant 0 : i32
    %c0_i32_1 = arith.constant 0 : i32
    return %arg0, %c0_i32, %arg1, %c0_i32_0 : i32, i32, i32, i32
  }
  func.func @transform_9(%arg0: i32, %arg1: i32) -> (i32, i32, i32, i32) {
    %c0_i32 = arith.constant 0 : i32
    %c0_i32_0 = arith.constant 0 : i32
    %c0_i32_1 = arith.constant 0 : i32
    return %arg0, %c0_i32, %arg1, %c0_i32_0 : i32, i32, i32, i32
  }
}

</mosaic_0001>

<bundles_post_ra>
// kernel: tpu_custom_call.1
= control target key start
LH: loop header
LB: loop body
LE: loop exit
PB: predicated region body
PF: predicated region fallthrough
CT: control target
= control target key end

     0   :  { %s2113_s0 = inlined_call_operand.vmem [shape: f32[2,16,32], index: 0, kind: input, shape index: {}]   ;;  %s2114_s1 = inlined_call_operand.vmem [shape: f32[1,32], index: 1, kind: input, shape index: {}]   ;;  %s2115_s2 = inlined_call_operand.hbm [shape: f32[32,32], index: 2, kind: input, shape index: {}]   ;;  %s2116_s3 = inlined_call_operand.hbm [shape: f32[32,32], index: 3, kind: input, shape index: {}]   ;;  %s2117_s4 = inlined_call_operand.hbm [shape: f32[32,32], index: 4, kind: input, shape index: {}]   ;;  %s2118_s5 = inlined_call_operand.vmem [shape: f32[16,4], index: 5, kind: input, shape index: {}]   ;;  %s2119_s6 = inlined_call_operand.vmem [shape: f32[16,4], index: 6, kind: input, shape index: {}]   ;;  %s2120_s7 = inlined_call_operand.vmem [shape: f32[2,4,16,8], index: 7, kind: output, shape index: {0}]   ;;  %s2121_s8 = inlined_call_operand.vmem [shape: f32[2,4,16,8], index: 8, kind: output, shape index: {1}]   ;;  %s2122_s9 = inlined_call_operand.vmem [shape: f32[2,4,16,8], index: 9, kind: output, shape index: {2}]  }
   0x1   :  { %2132 = sst [smem:[#allocation19_spill]] %s2122_s9 }
   0x2   :  { %15 = vsyncpa [#allocation3], 0 }
   0x3   :  { %16 = vsyncpa [#allocation5], 0  ;;  %s1719_s30 = smov 0   ;;  %s1721_s10 = smov 0  }
   0x4   :  { %s1723_s11 = smov 0   ;;  %s1725_s12 = smov 0  }
   0x5   :  { %s1727_s13 = smov 0   ;;  %s1729_s14 = smov 0  }
   0x6   :  { %s1731_s15 = smov 0  }
   0x7 LB: > { %2133 = sst [smem:[#allocation12_spill]] %s1628_s10  ;;  %s1289_s16 = sadd.s32 4294967295, %s1648_s15   ;;  %s1648_s15 = sphi %s1731_s15, %s22_s15   ;;  %s1644_s14 = sphi %s1729_s14, %s2157_s14   ;;  %s1640_s13 = sphi %s1727_s13, %s2156_s13   ;;  %s1636_s12 = sphi %s1725_s12, %s2155_s12   ;;  %s1632_s11 = sphi %s1723_s11, %s2154_s11   ;;  %s1628_s10 = sphi %s1721_s10, %s2153_s10   ;;  %s1624_s30 = sphi %s1719_s30, %s2152_s30  }
   0x8   : > { %2134 = sst [smem:[#allocation13_spill]] %s1640_s13  ;;  %s31_s17 = sadd.s32 1, %s1640_s13 }
   0x9   : > { %2135 = sst [smem:[#allocation14_spill]] %s1644_s14  ;;  %p32_p0 = scmp.ge.s32.totalorder %s31_s17, 2 }
   0xa   : > { %2136 = sst [smem:[#allocation15_spill]] %s1648_s15  ;;  %s34_s18 = sadd.s32 1, %s1644_s14 }
   0xb   : > { %s207_s19 = sadd.s32 1, %s1628_s10  ;;  %p217_p1 = scmp.ne.s32.totalorder %s1628_s10, %s1624_s30 }
   0xc   : > { %s2159_s17 = smov (%p32_p0, %s31_s17), 0  ;;  %s2161_s18 = smov (!%p32_p0, %s34_s18), %s1644_s14 }
   0xd   : > { %2137 = sst [smem:[#allocation16_spill]] %s2159_s17  ;;  %s203_s20 = ssub.s32 %s1640_s13, %s2159_s17 }
   0xe   : > { %p218_p2 = scmp.eq.s32.totalorder %s1289_s16, 3  ;;  %p36_p3 = scmp.ge.s32.totalorder %s2161_s18, 2 }
   0xf   : > { %p1291_p4 = scmp.ge.s32.totalorder %s1648_s15, 1  ;;  %p287_p6 = scmp.lt.s32.totalorder %s1648_s15, 5 }
  0x10   : > { %p1766_p5 = por %p218_p2, %p217_p1  ;;  %s2163_s18 = smov (%p36_p3, %s2161_s18), 0 }
  0x11   : > { %2139 = sst [smem:[#allocation17_spill]] %s2163_s18  ;;  %p1773_p7 = pnand %p1291_p4, %p287_p6 }
  0x12   : > { %s2138_s21 = scalar_select %p1766_p5, 1, 0 }
  0x13   : > { %s2140_s22 = scalar_select %p1773_p7, 1, 0 }
  0x14   : > { %s202_s23 = ssub.s32 %s1644_s14, %s2163_s18  ;;  %p1779_p8 = scmp.eq.s32.totalorder %s1289_s16, 0 }
  0x15   : > { %s204_s25 = sor.u32 %s203_s20, %s202_s23  ;;  %p1409_p9 = pneg %p1773_p7 }
  0x16   : > { %s2141_s24 = scalar_select %p1779_p8, 1, 0 }
  0x17   : > { %p205_p10 = scmp.eq.s32.totalorder %s204_s25, 0  ;;  %p1787_p11 = pnand %p1779_p8, %p1409_p9 }
  0x18   : > { %s1650_s28 = smov [#allocation4]   ;;  %s1502_s17 = scalar_lea.hbm %s2116_s3, 512 }
  0x19   : > { %s1792_s27 = scalar_select %p205_p10, %s1628_s10, %s207_s19  }
  0x1a   : > { %s315_s29 = sshll.u32 %s1650_s28, 4  ;;  %p1503_p12 = scmp.ne.s32.totalorder %s2116_s3, %s1502_s17  ;;  %s316_s29 = int_to_ptr.vmem [resolvable:$true] %s315_s29 }
  0x1b   : > { %2143 = sst [smem:[#allocation18_spill]] %s1792_s27  ;;  %p1802_p13 = pneg %p1787_p11 }
  0x1c   : > { %p1509_p2 = scmp.lt.u32.totalorder %s1502_s17, %s2116_s3 }
  0x1d   : > { %p1505_p0 = pnand %p1802_p13, %p1503_p12 }
  0x1f   : > { %p1506_p1 = pneg %p1505_p0 }
  0x21   : > { %p1511_p3 = pnand %p1509_p2, %p1506_p1 }
  0x23   : > { %1514 = shalt.err (!%p1511_p3)
}
  0x24   : > { %s1515_s18 = scalar_lea.vmem %s316_s29, 512  ;;  %p1523_p10 = scmp.lt.s32.totalorder %s316_s29, %s316_s29 }
  0x25   : > { %p1516_p4 = scmp.ne.s32.totalorder %s316_s29, %s1515_s18  ;;  %p1524_p5 = scmp.lt.s32.totalorder %s1515_s18, %s1515_s18 }
  0x27   : > { %p1518_p6 = pnand %p1516_p4, %p1802_p13  ;;  %p1525_p8 = por %p1524_p5, %p1523_p10 }
  0x29   : > { %p1519_p9 = pneg %p1518_p6 }
  0x2b   : > { %p1526_p7 = pnand %p1525_p8, %p1519_p9 }
  0x2d   : > { %1529 = shalt.err (!%p1526_p7)
}
  0x2e   : > { %s1651_s14 = smov 128   ;;  %s1652_s28 = smov 8  }
  0x2f   : > { %1415 = dma.hbm_to_vmem [thread:$0]  (!%p1787_p11), %s2116_s3, 512, %s316_s29, [#allocation5], %s1651_s14, %s1651_s14, %s1652_s28  }
  0x30   : > { %s1653_s20 = smov [#allocation2]   ;;  %s1654_s25 = smov [#allocation6]  }
  0x31   : > { %s302_s19 = sshll.u32 %s1653_s20, 4  ;;  %s328_s13 = sshll.u32 %s1654_s25, 4  ;;  %s303_s19 = int_to_ptr.vmem [resolvable:$true] %s302_s19  ;;  %s1821_s13 = int_to_ptr.vmem [resolvable:$true] %s328_s13 }
  0x32   : > { %s1530_s10 = scalar_lea.hbm %s2115_s2, 512 }
  0x33   : > { %p1531_p5 = scmp.ne.s32.totalorder %s2115_s2, %s1530_s10  ;;  %p1537_p12 = scmp.lt.u32.totalorder %s1530_s10, %s2115_s2 }
  0x35   : > { %p1533_p7 = pnand %p1531_p5, %p1802_p13 }
  0x37   : > { %p1534_p8 = pneg %p1533_p7 }
  0x39   : > { %p1539_p0 = pnand %p1537_p12, %p1534_p8 }
  0x3b   : > { %1542 = shalt.err (!%p1539_p0)
}
  0x3c   : > { %s1543_s16 = scalar_lea.vmem %s303_s19, 512  ;;  %p1551_p4 = scmp.lt.s32.totalorder %s303_s19, %s303_s19 }
  0x3d   : > { %p1544_p1 = scmp.ne.s32.totalorder %s303_s19, %s1543_s16  ;;  %p1552_p6 = scmp.lt.s32.totalorder %s1543_s16, %s1543_s16 }
  0x3f   : > { %p1546_p2 = pnand %p1544_p1, %p1802_p13  ;;  %p1553_p9 = por %p1552_p6, %p1551_p4 }
  0x41   : > { %p1547_p3 = pneg %p1546_p2 }
  0x43   : > { %p1554_p10 = pnand %p1553_p9, %p1547_p3 }
  0x45   : > { %1557 = shalt.err (!%p1554_p10)
}
  0x46   : > { %1412 = dma.hbm_to_vmem [thread:$0]  (!%p1787_p11), %s2115_s2, 512, %s303_s19, [#allocation3], %s1651_s14, %s1651_s14, %s1652_s28  }
  0x47   : > { %s1558_s20 = scalar_lea.hbm %s2117_s4, 512 }
  0x48   : > { %p1559_p5 = scmp.ne.s32.totalorder %s2117_s4, %s1558_s20  ;;  %p1565_p12 = scmp.lt.u32.totalorder %s1558_s20, %s2117_s4 }
  0x4a   : > { %p1561_p7 = pnand %p1559_p5, %p1802_p13 }
  0x4c   : > { %p1562_p8 = pneg %p1561_p7 }
  0x4e   : > { %p1567_p0 = pnand %p1565_p12, %p1562_p8 }
  0x50   : > { %1570 = shalt.err (!%p1567_p0)
}
  0x51   : > { %s1571_s19 = scalar_lea.vmem %s1821_s13, 512  ;;  %p1579_p4 = scmp.lt.s32.totalorder %s1821_s13, %s1821_s13 }
  0x52   : > { %p1572_p1 = scmp.ne.s32.totalorder %s1821_s13, %s1571_s19  ;;  %p1580_p6 = scmp.lt.s32.totalorder %s1571_s19, %s1571_s19 }
  0x54   : > { %p1574_p2 = pnand %p1572_p1, %p1802_p13  ;;  %p1581_p9 = por %p1580_p6, %p1579_p4 }
  0x56   : > { %p1575_p3 = pneg %p1574_p2 }
  0x58   : > { %p1582_p10 = pnand %p1581_p9, %p1575_p3 }
  0x5a   : > { %1585 = shalt.err (!%p1582_p10)
}
  0x5b   : > { %1418 = dma.hbm_to_vmem [thread:$0]  (!%p1787_p11), %s2117_s4, 512, %s1821_s13, [#allocation5], %s1651_s14, %s1651_s14, %s1652_s28  }
  0x5c   : > { %p2145_p5 = scmp.ne.s32.totalorder %s2140_s22, 0 }
  0x5d   : > { %p2146_p13 = scmp.ne.s32.totalorder (!%p2145_p5), %s2141_s24, 0 }
  0x5e   : > { %369 = sbr.rel (%p2145_p5) target bundleno = 784 (0x310), region = 48 }
  0x65   : > { %1615 = dma.done.wait (%p2146_p13), [#allocation3], 512  }
  0x66   : > { %1617 = vsyncadd (%p2146_p13), [#allocation3], 4294966784 }
  0x67   : > { %1619 = dma.done.wait (%p2146_p13), [#allocation5], 1024  }
  0x68   : > { %1621 = vsyncadd (%p2146_p13), [#allocation5], 4294966272  ;;  %p431_p11 = scmp.lt.s32.totalorder %s1636_s12, 1  ;;  %p433_p7 = scmp.lt.s32.totalorder %s1632_s11, 1  ;;  %vm450_vm0 = vcmask 261120   ;;  %v466_v3 = vld [vmem:[#allocation2] sm:$0xff] }
  0x69   : > { %v467_v4 = vld [vmem:[#allocation2 + $0x8] sm:$0xff]  ;;  %v544_v5 = vld [vmem:[#allocation4] sm:$0xff]  ;;  %v1655_v6 = vmov 0.0|0.0   ;;  %v468_v9 = vld [vmem:[#allocation2 + $0x10] sm:$0xff]  ;;  %vm1656_vm1 = vmmov 0   ;;  %v1657_v14 = vmov 0.0  }
  0x6a   : > { %s432_s13 = scalar_select %p431_p11, %s1636_s12, 1  ;;  %1379 = vmatprep.subr.bf16.mxu0 %v1655_v6  ;;  %v1380_v7 = vpack.c.bf16 %v467_v4, %v466_v3  ;;  %1385 = vmatprep.subr.bf16.mxu1 %v1655_v6  ;;  %v545_v8 = vld [vmem:[#allocation4 + $0x8] sm:$0xff]  ;;  %v469_v10 = vld [vmem:[#allocation2 + $0x18] sm:$0xff]  ;;  %v546_v12 = vld [vmem:[#allocation4 + $0x10] sm:$0xff]  ;;  %vm718_vm2 = vcmask 64512   ;;  %vm716_vm3 = vcmask 31744  }
  0x6b   : > { %s1884_s22 = scalar_select %p433_p7, %s1632_s11, 1  ;;  %v1386_v11 = vpack.c.bf16 %v545_v8, %v544_v5  ;;  %v547_v13 = vld [vmem:[#allocation4 + $0x18] sm:$0xff]  ;;  %1354 = vmatprep.mubr.msk.f32.mxu0 %vm1656_vm1, %v1657_v14  ;;  %1365 = vmatprep.mubr.msk.f32.mxu1 %vm1656_vm1, %v1657_v14  ;;  %v1383_v15 = vpack.c.bf16 %v469_v10, %v468_v9  ;;  %v618_v22 = vld [vmem:[#allocation6] sm:$0xff]  ;;  %v619_v23 = vld [vmem:[#allocation6 + $0x8] sm:$0xff] }
  0x6c   : > { %s1303_s26 = sshll.u32 %s432_s13, 1  ;;  %1381 = vmatpush3.bf16.msra.mxu0 %v1380_v7  ;;  %v1389_v16 = vpack.c.bf16 %v547_v13, %v546_v12  ;;  %s1658_s18 = smov 8   ;;  %v1307_v25 = vld [vmem:[%s2114_s1] ss:$0 sm:$0xff]  ;;  %v1392_v27 = vpack.c.bf16 %v619_v23, %v618_v22  ;;  %v620_v29 = vld [vmem:[#allocation6 + $0x10] sm:$0xff]  ;;  %v621_v30 = vld [vmem:[#allocation6 + $0x18] sm:$0xff] }
  0x6d   : > { %s436_s23 = sadd.s32 %s1303_s26, %s1884_s22  ;;  %1387 = vmatpush3.bf16.msra.mxu1 %v1386_v11  ;;  %1382 = vmatprep.subr.bf16.mxu0 %v1655_v6  ;;  %s1305_s24 = sshll.u32 %s1884_s22, 3  ;;  %v1395_v31 = vpack.c.bf16 %v621_v30, %v620_v29 }
  0x6e   : > { %s1304_s14 = sshll.u32 %s436_s23, 3  ;;  %1388 = vmatprep.subr.bf16.mxu1 %v1655_v6  ;;  %s446_s25 = scalar_lea.vmem %s2119_s6, %s1305_s24 }
  0x6f   : > { %s438_s15 = scalar_lea.vmem %s2113_s0, %s1304_s14  ;;  %v1906_v17 = vld [vmem:[%s446_s25] sm:$0xff]  ;;  %s442_s19 = scalar_lea.vmem %s2118_s5, %s1305_s24 }
  0x70   : > { %v1890_v0 = vld [vmem:[%s438_s15] sm:$0xff]  ;;  %1384 = vmatpush3.bf16.msra.mxu0 %v1383_v15  ;;  %754 = vrot.lane.b32.xlu1 %v1906_v17, %s1658_s18  ;;  %s1659_s16 = smov 12   ;;  %s1660_s9 = smov 20  }
  0x71   : > { %v449_v1 = vmul.f32 %v1890_v0, %v1890_v0  ;;  %1390 = vmatpush3.bf16.msra.mxu1 %v1389_v16  ;;  %1391 = vmatprep.subr.bf16.mxu0 %v1655_v6  ;;  %v1913_v18 = vld [vmem:[%s442_s19] sm:$0xff]  ;;  %s1661_s13 = smov 16   ;;  %s1662_s22 = smov 28  }
  0x72   : > { %s1663_s26 = smov 24   ;;  %s1664_s23 = smov 4  }
  0x73   : > { %v451_v2 = vsel %vm450_vm0, %v449_v1, 0.0  ;;  %s416_s10 = sand.u32 1, %s1624_s30   ;;  %s1665_s15 = smov 124  }
  0x74   : > { %452 = vadd.xlane.f32.xlu0 %v451_v2  ;;  %809 = vrot.lane.b32.xlu1 %v1906_v17, %s1660_s9  ;;  %s1943_s24 = sshll.u32 %s416_s10, 5  ;;  %s1666_s27 = smov 120  }
  0x75   : > { %s1954_s30 = scalar_lea.vmem [#allocation9], %s1943_s24  ;;  %s1667_s20 = smov 112  }
  0x76   : > { %s1668_s25 = smov 104   ;;  %s2029_s17 = scalar_lea.vmem [#allocation7], %s1943_s24 }
  0x77   : > { %p2147_p8 = scmp.ne.s32.totalorder %s2138_s21, 0 }
  0x78   : > { %822 = vrot.lane.b32.xlu1 %v1906_v17, %s1661_s13  ;;  %s1323_s29 = sshll.u32 (%p2147_p8), %s1636_s12, 3 }
  0x79   : > { %s955_s19 = sadd.s32 (%p2147_p8), %s1632_s11, %s1323_s29 }
  0x7c   : > { %876 = vrot.lane.b32.xlu1 %v1906_v17, %s1662_s22 }
  0x80   : > { %889 = vrot.lane.b32.xlu1 %v1906_v17, %s1663_s26 }
  0x84   : > { %696 = vrot.lane.b32.xlu1 %v1906_v17, %s1664_s23 }
  0x88   : > { %737 = vrot.lane.b32.xlu1 %v1913_v18, %s1658_s18  ;;  %s2019_s18 = scalar_lea.vmem [#allocation8], %s1943_s24 }
  0x8a   : > { %741 = vrot.lane.b32.xlu0 %v1906_v17, %s1659_s16 }
  0x8c   : > { %805 = vrot.lane.b32.xlu1 %v1913_v18, %s1661_s13 }
  0x8e   : > { %750 = vrot.lane.b32.xlu0 %v1913_v18, %s1659_s16  ;;  %s1324_s16 = sshll.u32 (%p2147_p8), %s955_s19, 3 }
  0x90   : > { %872 = vrot.lane.b32.xlu1 %v1913_v18, %s1663_s26 }
  0x92   : > { %818 = vrot.lane.b32.xlu0 %v1913_v18, %s1660_s9 }
  0x96   : > { %885 = vrot.lane.b32.xlu0 %v1913_v18, %s1662_s22  ;;  %s957_s22 = scalar_lea.vmem (%p2147_p8), %s2120_s7, %s1324_s16 }
  0xe2   : > { %v755_v32 = vpop.permute.xlu1 %754 }
  0xe6   : > { %v810_v33 = vpop.permute.xlu1 %809 }
  0xea   : > { %v823_v41 = vpop.permute.xlu1 %822 }
  0xee   : > { %v877_v49 = vpop.permute.xlu1 %876 }
  0xf2   : > { %v890_v52 = vpop.permute.xlu1 %889 }
  0xf6   : > { %v697_v57 = vpop.permute.xlu1 %696 }
  0xfa   : > { %v738_v62 = vpop.permute.xlu1 %737 }
 0x101   : > { %v453_v19 = vpop.xlane.xlu0 %452 }
 0x102   : > { %v455_v20 = vmul.f32 0.03125, %v453_v19 }
 0x104   : > { %v456_v21 = vadd.f32 1e-05, %v455_v20 }
 0x105   : > { %v742_v34 = vpop.permute.xlu0 %741 }
 0x106   : > { %1500 = vrsqrt.f32 %v456_v21 }
 0x109   : > { %v751_v63 = vpop.permute.xlu0 %750 }
 0x10d   : > { %v819_v1 = vpop.permute.xlu0 %818 }
 0x110   : > { %v1501_v24 = vpop.eup %1500 }
 0x111   : > { %v458_v26 = vmul.f32 %v1501_v24, %v1890_v0  ;;  %v806_v0 = vpop.permute.xlu1 %805  ;;  %v886_v3 = vpop.permute.xlu0 %885 }
 0x113   : > { %v465_v28 = vmul.f32 %v1307_v25, %v458_v26 }
 0x115   : > { %1355 = vmatmul.mubr.msk.f32.vlgmr.msra.gmra.mrb[0].mxu0 %vm450_vm0, %v465_v28  ;;  %1366 = vmatmul.mubr.msk.f32.vlgmr.msra.gmra.mrb[0].mxu1 %vm450_vm0, %v465_v28  ;;  %v873_v2 = vpop.permute.xlu1 %872 }
 0x116   : > { %1393 = vmatpush3.bf16.msra.mxu0 %v1392_v27  ;;  %1376 = vmatprep.mubr.msk.f32.mxu0 %vm1656_vm1, %v1657_v14 }
 0x117   : > { %1394 = vmatprep.subr.bf16.mxu0 %v1655_v6 }
 0x11a   : > { %1396 = vmatpush3.bf16.msra.mxu0 %v1395_v31 }
 0x11d   : > { %1377 = vmatmul.mubr.msk.f32.vlgmr.msra.gmra.mrb[2].mxu0 %vm450_vm0, %v465_v28 }
 0x1e8   : > { %v539_v35 = vpop.f32.mrb[0].mxu0  ;;  %v1936_v36 = vpop.f32.mrb[0].mxu1 }
 0x1e9   : > { %v1356_v37 = vpop.f32.mrb[1].mxu0  ;;  %v1367_v38 = vpop.f32.mrb[1].mxu1  ;;  %v782_v39 = vmul.f32 %v755_v32, %v1936_v36  ;;  %v775_v40 = vmul.f32 %v742_v34, %v1936_v36  ;;  %v1945_v42 = vmul.f32 0.35355338, %v539_v35  ;;  %v850_v43 = vmul.f32 %v823_v41, %v1936_v36 }
 0x1ea   : > { %v843_v44 = vmul.f32 %v810_v33, %v1936_v36  ;;  %v917_v55 = vmul.f32 %v890_v52, %v1936_v36  ;;  %v910_v56 = vmul.f32 %v877_v49, %v1936_v36  ;;  %v721_v58 = vmul.f32 %v697_v57, %v1936_v36 }
 0x1eb   : > { %784 = vrot.lane.b32.xlu0 %v782_v39, %s1664_s23  ;;  %777 = vrot.lane.b32.xlu1 %v775_v40, %s1665_s15  ;;  %v757_v47 = vmul.f32 %v755_v32, %v1945_v42  ;;  %v744_v48 = vmul.f32 %v742_v34, %v1945_v42  ;;  %v825_v50 = vmul.f32 %v823_v41, %v1945_v42 }
 0x1ec   : > { %v812_v51 = vmul.f32 %v810_v33, %v1945_v42  ;;  %v892_v53 = vmul.f32 %v890_v52, %v1945_v42  ;;  %v879_v54 = vmul.f32 %v877_v49, %v1945_v42  ;;  %v699_v59 = vmul.f32 %v697_v57, %v1945_v42 }
 0x1ed   : > { %v728_v60 = vmul.f32 %v1906_v17, %v1936_v36  ;;  %v710_v61 = vmul.f32 %v1906_v17, %v1945_v42  ;;  %v774_v4 = vmul.f32 %v738_v62, %v1936_v36  ;;  %v781_v5 = vmul.f32 %v751_v63, %v1936_v36 }
 0x1ee   : > { %v842_v10 = vmul.f32 %v806_v0, %v1936_v36  ;;  %v849_v11 = vmul.f32 %v819_v1, %v1936_v36  ;;  %v916_v23 = vmul.f32 %v886_v3, %v1936_v36  ;;  %v909_v24 = vmul.f32 %v873_v2, %v1936_v36 }
 0x1ef   : > { %852 = vrot.lane.b32.xlu0 %v850_v43, %s1664_s23  ;;  %845 = vrot.lane.b32.xlu1 %v843_v44, %s1665_s15  ;;  %v740_v29 = vmul.f32 %v738_v62, %v1945_v42  ;;  %v753_v30 = vmul.f32 %v751_v63, %v1945_v42  ;;  %v808_v35 = vmul.f32 %v806_v0, %v1945_v42 }
 0x1f0   : > { %v1951_v45 = vpop.f32.mrb[2].mxu0  ;;  %v821_v37 = vmul.f32 %v819_v1, %v1945_v42  ;;  %v720_v39 = vmul.f32 %v1913_v18, %v1936_v36  ;;  %v875_v49 = vmul.f32 %v873_v2, %v1945_v42 }
 0x1f1   : > { %736 = vst.msk [vmem:[%s1954_s30] sm:$0xff] %vm718_vm2, %v1951_v45  ;;  %v1378_v46 = vpop.f32.mrb[3].mxu0 }
 0x1f3   : > { %759 = vrot.lane.b32.xlu0 %v757_v47, %s1664_s23  ;;  %746 = vrot.lane.b32.xlu1 %v744_v48, %s1665_s15  ;;  %v888_v48 = vmul.f32 %v886_v3, %v1945_v42 }
 0x1f7   : > { %827 = vrot.lane.b32.xlu0 %v825_v50, %s1664_s23  ;;  %814 = vrot.lane.b32.xlu1 %v812_v51, %s1665_s15  ;;  %v694_v51 = vmul.f32 %v1913_v18, %v1945_v42 }
 0x1fb   : > { %894 = vrot.lane.b32.xlu0 %v892_v53, %s1664_s23  ;;  %881 = vrot.lane.b32.xlu1 %v879_v54, %s1665_s15 }
 0x1ff   : > { %919 = vrot.lane.b32.xlu0 %v917_v55, %s1664_s23  ;;  %912 = vrot.lane.b32.xlu1 %v910_v56, %s1665_s15 }
 0x203   : > { %723 = vrot.lane.b32.xlu0 %v721_v58, %s1665_s15  ;;  %706 = vrot.lane.b32.xlu1 %v1913_v18, %s1664_s23 }
 0x207   : > { %701 = vrot.lane.b32.xlu0 %v699_v59, %s1665_s15  ;;  %730 = vrot.lane.b32.xlu1 %v728_v60, %s1664_s23 }
 0x20b   : > { %800 = vrot.lane.b32.xlu0 %v1951_v45, %s1666_s27  ;;  %712 = vrot.lane.b32.xlu1 %v710_v61, %s1664_s23 }
 0x25d   : > { %v778_v6 = vpop.permute.xlu1 %777  ;;  %v785_v7 = vpop.permute.xlu0 %784 }
 0x25e   : > { %v780_v8 = vsub.f32 %v774_v4, %v778_v6  ;;  %v787_v9 = vadd.f32 %v785_v7, %v781_v5 }
 0x260   : > { %789 = vrot.lane.b32.xlu0 %v780_v8, %s1666_s27  ;;  %793 = vrot.lane.b32.xlu1 %v787_v9, %s1666_s27 }
 0x261   : > { %v846_v12 = vpop.permute.xlu1 %845  ;;  %v853_v13 = vpop.permute.xlu0 %852 }
 0x262   : > { %v848_v14 = vsub.f32 %v842_v10, %v846_v12  ;;  %v855_v15 = vadd.f32 %v853_v13, %v849_v11 }
 0x264   : > { %857 = vrot.lane.b32.xlu0 %v848_v14, %s1667_s20  ;;  %861 = vrot.lane.b32.xlu1 %v855_v15, %s1667_s20 }
 0x265   : > { %v747_v16 = vpop.permute.xlu1 %746  ;;  %v760_v17 = vpop.permute.xlu0 %759 }
 0x266   : > { %v749_v33 = vsub.f32 %v740_v29, %v747_v16  ;;  %v762_v34 = vadd.f32 %v760_v17, %v753_v30 }
 0x269   : > { %v815_v19 = vpop.permute.xlu1 %814  ;;  %v828_v20 = vpop.permute.xlu0 %827 }
 0x26a   : > { %v817_v43 = vsub.f32 %v808_v35, %v815_v19  ;;  %v830_v44 = vadd.f32 %v828_v20, %v821_v37 }
 0x26d   : > { %v882_v21 = vpop.permute.xlu1 %881  ;;  %v895_v22 = vpop.permute.xlu0 %894 }
 0x26e   : > { %v884_v54 = vsub.f32 %v875_v49, %v882_v21  ;;  %v897_v55 = vadd.f32 %v895_v22, %v888_v48 }
 0x271   : > { %v913_v25 = vpop.permute.xlu1 %912  ;;  %v920_v26 = vpop.permute.xlu0 %919 }
 0x272   : > { %v915_v27 = vsub.f32 %v909_v24, %v913_v25  ;;  %v922_v28 = vadd.f32 %v920_v26, %v916_v23 }
 0x274   : > { %924 = vrot.lane.b32.xlu0 %v915_v27, %s1668_s25  ;;  %928 = vrot.lane.b32.xlu1 %v922_v28, %s1668_s25 }
 0x275   : > { %v707_v31 = vpop.permute.xlu1 %706  ;;  %v724_v32 = vpop.permute.xlu0 %723 }
 0x276   : > { %v727_v38 = vmul.f32 %v707_v31, %v1936_v36  ;;  %v726_v46 = vsub.f32 %v720_v39, %v724_v32  ;;  %v709_v50 = vmul.f32 %v707_v31, %v1945_v42 }
 0x278   : > { %764 = vrot.lane.b32.xlu0 %v749_v33, %s1666_s27  ;;  %768 = vrot.lane.b32.xlu1 %v762_v34, %s1666_s27 }
 0x279   : > { %v731_v40 = vpop.permute.xlu1 %730  ;;  %v702_v41 = vpop.permute.xlu0 %701 }
 0x27a   : > { %v733_v47 = vadd.f32 %v731_v40, %v727_v38  ;;  %v704_v56 = vsub.f32 %v694_v51, %v702_v41 }
 0x27c   : > { %v734_v36 = vsel %vm716_vm3, %v726_v46, %v733_v47  ;;  %832 = vrot.lane.b32.xlu0 %v817_v43, %s1667_s20  ;;  %836 = vrot.lane.b32.xlu1 %v830_v44, %s1667_s20 }
 0x27d   : > { %735 = vst.msk [vmem:[%s2019_s18] sm:$0xff] %vm718_vm2, %v734_v36  ;;  %v713_v52 = vpop.permute.xlu1 %712  ;;  %v801_v53 = vpop.permute.xlu0 %800 }
 0x27e   : > { %v715_v57 = vadd.f32 %v713_v52, %v709_v50  ;;  %1313 = vst.msk [vmem:[%s1954_s30 + $0x8] sm:$0xff] %vm718_vm2, %v801_v53 }
 0x280   : > { %v717_v18 = vsel %vm716_vm3, %v704_v56, %v715_v57  ;;  %899 = vrot.lane.b32.xlu0 %v884_v54, %s1668_s25  ;;  %903 = vrot.lane.b32.xlu1 %v897_v55, %s1668_s25 }
 0x281   : > { %719 = vst.msk [vmem:[%s2029_s17] sm:$0xff] %vm718_vm2, %v717_v18 }
 0x284   : > { %934 = vrot.lane.b32.xlu0 %v1951_v45, %s1668_s25  ;;  %867 = vrot.lane.b32.xlu1 %v1951_v45, %s1667_s20 }
 0x288   : > { %v991_v12 = vld [vmem:[%s2029_s17] sm:$0xff] (%p2147_p8) }
 0x289   : > { %992 = vst [vmem:[%s957_s22] sm:$0xff] (%p2147_p8), %v991_v12 }
 0x2d2   : > { %v794_v42 = vpop.permute.xlu1 %793  ;;  %v790_v58 = vpop.permute.xlu0 %789 }
 0x2d3   : > { %v796_v59 = vsel %vm716_vm3, %v790_v58, %v794_v42 }
 0x2d4   : > { %1312 = vst.msk [vmem:[%s2019_s18 + $0x8] sm:$0xff] %vm718_vm2, %v796_v59 }
 0x2d6   : > { %v862_v60 = vpop.permute.xlu1 %861  ;;  %v858_v61 = vpop.permute.xlu0 %857 }
 0x2d7   : > { %v864_v62 = vsel %vm716_vm3, %v858_v61, %v862_v60 }
 0x2d8   : > { %1315 = vst.msk [vmem:[%s2019_s18 + $0x10] sm:$0xff] %vm718_vm2, %v864_v62 }
 0x2e6   : > { %v929_v63 = vpop.permute.xlu1 %928  ;;  %v925_v0 = vpop.permute.xlu0 %924 }
 0x2e7   : > { %v931_v1 = vsel %vm716_vm3, %v925_v0, %v929_v63 }
 0x2e8   : > { %1318 = vst.msk [vmem:[%s2019_s18 + $0x18] sm:$0xff] %vm718_vm2, %v931_v1 }
 0x2ea   : > { %v769_v45 = vpop.permute.xlu1 %768  ;;  %v765_v2 = vpop.permute.xlu0 %764 }
 0x2eb   : > { %v771_v3 = vsel %vm716_vm3, %v765_v2, %v769_v45 }
 0x2ec   : > { %1311 = vst.msk [vmem:[%s2029_s17 + $0x8] sm:$0xff] %vm718_vm2, %v771_v3 }
 0x2ee   : > { %v837_v4 = vpop.permute.xlu1 %836  ;;  %v833_v5 = vpop.permute.xlu0 %832 }
 0x2ef   : > { %v839_v6 = vsel %vm716_vm3, %v833_v5, %v837_v4 }
 0x2f0   : > { %1314 = vst.msk [vmem:[%s2029_s17 + $0x10] sm:$0xff] %vm718_vm2, %v839_v6 }
 0x2f1   : > { %953 = sbr.rel (!%p2147_p8) target bundleno = 765 (0x2fd), region = 64 }
 0x2f2   : > { %v904_v7 = vpop.permute.xlu1 %903  ;;  %v900_v8 = vpop.permute.xlu0 %899 }
 0x2f3   : > { %v906_v9 = vsel %vm716_vm3, %v900_v8, %v904_v7  ;;  %v993_v13 = vld [vmem:[%s2029_s17 + $0x8] sm:$0xff] (%p2147_p8) }
 0x2f4   : > { %1317 = vst.msk [vmem:[%s2029_s17 + $0x18] sm:$0xff] %vm718_vm2, %v906_v9  ;;  %994 = vst [vmem:[%s957_s22 + $0x10] sm:$0xff] (%p2147_p8), %v993_v13 }
 0x2f6   : > { %v868_v10 = vpop.permute.xlu1 %867  ;;  %v935_v11 = vpop.permute.xlu0 %934 }
 0x2f7   : > { %1316 = vst.msk [vmem:[%s1954_s30 + $0x10] sm:$0xff] %vm718_vm2, %v868_v10  ;;  %1319 = vst.msk [vmem:[%s1954_s30 + $0x18] sm:$0xff] %vm718_vm2, %v935_v11  ;;  %v995_v14 = vld [vmem:[%s2029_s17 + $0x10] sm:$0xff] (%p2147_p8) }
 0x2f8   : > { %996 = vst [vmem:[%s957_s22 + $0x20] sm:$0xff] %v995_v14 }
 0x2fb   : > { %v997_v15 = vld [vmem:[%s2029_s17 + $0x18] sm:$0xff] }
 0x2fc   : > { %998 = vst [vmem:[%s957_s22 + $0x30] sm:$0xff] %v997_v15 }
 0x2fd PF: > { %p2148_p12 = scmp.ne.s32.totalorder %s2138_s21, 0 }
 0x2fe   : > { %s1325_s26 = sshll.u32 (%p2148_p12), %s1636_s12, 3  ;;  %v1042_v16 = vld [vmem:[%s2019_s18] sm:$0xff] (%p2148_p12)  ;;  %v1044_v17 = vld [vmem:[%s2019_s18 + $0x8] sm:$0xff] (%p2148_p12)  ;;  %v1046_v19 = vld [vmem:[%s2019_s18 + $0x10] sm:$0xff] (%p2148_p12) }
 0x2ff   : > { %1004 = sbr.rel (!%p2148_p12) target bundleno = 774 (0x306), region = 102  ;;  %s1006_s23 = sadd.s32 (%p2148_p12), %s1632_s11, %s1325_s26  ;;  %v1048_v20 = vld [vmem:[%s2019_s18 + $0x18] sm:$0xff] (%p2148_p12) }
 0x300   : > { %s1326_s14 = sshll.u32 (%p2148_p12), %s1006_s23, 3 }
 0x301   : > { %s1008_s15 = scalar_lea.vmem (%p2148_p12), %s2121_s8, %s1326_s14 }
 0x302   : > { %1043 = vst [vmem:[%s1008_s15] sm:$0xff] (%p2148_p12), %v1042_v16  ;;  %1045 = vst [vmem:[%s1008_s15 + $0x10] sm:$0xff] (%p2148_p12), %v1044_v17 }
 0x303   : > { %1047 = vst [vmem:[%s1008_s15 + $0x20] sm:$0xff] (%p2148_p12), %v1046_v19  ;;  %1049 = vst [vmem:[%s1008_s15 + $0x30] sm:$0xff] (%p2148_p12), %v1048_v20 }
 0x306 PF: > { %p2149_p0 = scmp.ne.s32.totalorder %s2138_s21, 0 }
 0x307   : > { %s1327_s24 = sshll.u32 (%p2149_p0), %s1636_s12, 3  ;;  %v1093_v21 = vld [vmem:[%s1954_s30] sm:$0xff] (%p2149_p0)  ;;  %v1095_v22 = vld [vmem:[%s1954_s30 + $0x8] sm:$0xff] (%p2149_p0)  ;;  %v1097_v23 = vld [vmem:[%s1954_s30 + $0x10] sm:$0xff] (%p2149_p0)  ;;  %s2150_s17 = sld [smem:[#allocation19_spill]] (%p2149_p0) }
 0x308   : > { %1055 = sbr.rel (!%p2149_p0) target bundleno = 784 (0x310), region = 140  ;;  %s1057_s27 = sadd.s32 (%p2149_p0), %s1632_s11, %s1327_s24  ;;  %v1099_v24 = vld [vmem:[%s1954_s30 + $0x18] sm:$0xff] (%p2149_p0) }
 0x309   : > { %s1328_s20 = sshll.u32 (%p2149_p0), %s1057_s27, 3 }
 0x30d   : > { %s1059_s29 = scalar_lea.vmem (%p2149_p0), %s2150_s17, %s1328_s20 }
 0x30e   : > { %1094 = vst [vmem:[%s1059_s29] sm:$0xff] (%p2149_p0), %v1093_v21  ;;  %1096 = vst [vmem:[%s1059_s29 + $0x10] sm:$0xff] (%p2149_p0), %v1095_v22 }
 0x30f   : > { %1098 = vst [vmem:[%s1059_s29 + $0x20] sm:$0xff] %v1097_v23  ;;  %1100 = vst [vmem:[%s1059_s29 + $0x30] sm:$0xff] %v1099_v24 }
 0x310 PF: > { %s2151_s21 = sld [smem:[#allocation15_spill]]  ;;  %s2152_s30 = sld [smem:[#allocation12_spill]] }
 0x311   : > { %s2153_s10 = sld [smem:[#allocation18_spill]]  ;;  %s2154_s11 = sld [smem:[#allocation13_spill]] }
 0x312   : > { %s2155_s12 = sld [smem:[#allocation14_spill]]  ;;  %s2156_s13 = sld [smem:[#allocation16_spill]] }
 0x313   : > { %s2157_s14 = sld [smem:[#allocation17_spill]] }
 0x316   : > { %s22_s15 = sadd.s32 1, %s2151_s21  }
 0x317   : > { %p19_p1 = scmp.ge.s32.totalorder %s22_s15, 6  }
 0x319   :  { %21 = sbr.rel (!%p19_p1) target bundleno = 7 (0x7), region = 244 }
 0x320   :  { %1130 = vsyncpa [#allocation3], 1 }
 0x321   :  { %1132 = vsyncpa [#allocation3 + $0x1], 1 }
 0x322   :  { %1133 = vsyncpa [#allocation5], 1 }

</bundles_post_ra>
